<compile_context>
chip_gen: v7x
topology: tpu7x:2x2x1
jax: 0.10.0
libtpu: 0.0.40
codegen_flags: <defaults>
</compile_context>

<pallas_src>
import functools

import jax
import jax.numpy as jnp
from jax.experimental import pallas as pl
from jax.experimental.pallas import tpu as pltpu

EPS = 1e-5  # nn.GroupNorm default eps


# ------------------------------- Pallas kernel ------------------------------

def shuffle_attention_kernel(x_ref, p_ref, o_ref):
    # x_ref: [TB, 2, Chalf, HW]  TB samples, both shuffle slots; rows = channels
    # p_ref: [3, Chalf, 1]       row 0: gate weight, row 1: gate bias,
    #                            row 2: branch mask (1 -> channel, 0 -> spatial)
    # o_ref: [TB, Chalf, 2*HW]   slot-interleaved so reshape == channel_shuffle
    hw = x_ref.shape[-1]
    w = p_ref[0]                                       # [Chalf, 1]
    b = p_ref[1]                                       # [Chalf, 1]
    m = p_ref[2]                                       # [Chalf, 1]

    for g in range(2):                                 # static unroll over slots
        x = x_ref[:, g].astype(jnp.float32)            # [TB, Chalf, HW]

        # Per-row stats over the spatial (lane) axis.  The mean doubles as the
        # AdaptiveAvgPool2d(1) result (channel branch) and GroupNorm mean
        # (spatial branch).
        mu = jnp.mean(x, axis=-1, keepdims=True)                    # [TB, Chalf, 1]
        var = jnp.mean((x - mu) ** 2, axis=-1, keepdims=True)       # [TB, Chalf, 1]
        xhat = (x - mu) * jax.lax.rsqrt(var + EPS)                  # [TB, Chalf, HW]

        # Channel-attention rows gate on the pooled mean; spatial-attention rows
        # gate on the normalized activation.  GroupNorm affine + sweight/sbias
        # (and cweight/cbias) were pre-folded into (w, b) per row on the host.
        t = jnp.where(m > 0.5, mu, xhat)                            # [TB, Chalf, HW]
        gate = jax.nn.sigmoid(w * t + b)
        o_ref[:, :, g * hw:(g + 1) * hw] = (x * gate).astype(o_ref.dtype)


# -------------------------------- wrapper -----------------------------------

def shuffle_attention_forward(x, params, G, *, block_bytes=2 << 20):
    """ShuffleAttention.forward. x: [B, C, H, W] -> [B, C, H, W] (same dtype)."""
    B, C, H, W = x.shape
    Cg = C // G            # channels per group after view(B*G, C//G, H, W)
    Ch = Cg // 2           # channels per attention branch == C // (2*G)
    HW = H * W
    Chalf = C // 2
    assert G % 2 == 0, "G must be even for channel_shuffle(groups=2) layout"
    assert HW % 128 == 0, "H*W must be a multiple of 128 for this layout"
    assert Chalf % 8 == 0, "C//2 must be a multiple of 8 for this layout"
    # TODO(synk): padded / Element-indexed path for non-(8,128)-aligned H*W, C.

    cw, cb = params["cweight"], params["cbias"]         # [Ch]
    sw, sb = params["sweight"], params["sbias"]         # [Ch]
    gw, gb = params["gn_weight"], params["gn_bias"]     # [Ch]

    # Fold each branch's gate argument into one per-(group-local-channel)
    # affine:  channel half: cw*pooled + cb ; spatial half:
    # sw*(gn_w*xhat + gn_b) + sb = (sw*gn_w)*xhat + (sw*gn_b + sb).
    f32 = jnp.float32
    w_group = jnp.concatenate([cw, sw * gw]).astype(f32)               # [Cg]
    b_group = jnp.concatenate([cb, sw * gb + sb]).astype(f32)          # [Cg]
    m_group = jnp.concatenate([jnp.ones((Ch,), f32), jnp.zeros((Ch,), f32)])
    wbm = jnp.stack([w_group, b_group, m_group])                       # [3, Cg]
    wbm = jnp.tile(wbm, (1, G // 2))[..., None]                        # [3, C//2, 1]

    # Free contiguous reshape (model dtype, no cast): channel dim ->
    # (shuffle slot, C//2), spatial -> HW.
    x4 = x.reshape(B, 2, Chalf, HW)

    # Coarsen: TB samples per grid step.  Keep each block <= block_bytes and
    # keep >= 2 grid steps whenever B >= 2 so the "parallel" axis can be
    # megacore-sharded on v7x.  TB divides B to avoid partial blocks.
    per_sample_bytes = C * HW * x.dtype.itemsize
    TB = 1
    for tb in range(1, B + 1):
        if B % tb:
            continue
        if tb * per_sample_bytes > block_bytes:
            continue
        if B >= 2 and B // tb < 2:
            continue
        TB = tb
    grid = (B // TB,)

    out3 = pl.pallas_call(
        shuffle_attention_kernel,
        out_shape=jax.ShapeDtypeStruct((B, Chalf, 2 * HW), x.dtype),
        grid=grid,
        in_specs=[
            pl.BlockSpec((TB, 2, Chalf, HW), lambda i: (i, 0, 0, 0)),
            pl.BlockSpec((3, Chalf, 1), lambda i: (0, 0, 0)),
        ],
        out_specs=pl.BlockSpec((TB, Chalf, 2 * HW), lambda i: (i, 0, 0)),
        compiler_params=pltpu.CompilerParams(
            dimension_semantics=("parallel",)),
    )(x4, wbm)

    # Contiguous reshape realizes channel_shuffle(groups=2) for free:
    # out channel k = 2*cg + slot.
    return out3.reshape(B, C, H, W)


# --------------------------- pure-JAX reference -----------------------------

def ref_forward(x, params, G):
    B, C, H, W = x.shape
    Ch = C // (2 * G)
    xg = x.reshape(B * G, C // G, H, W)
    x0, x1 = xg[:, :Ch], xg[:, Ch:]
    # channel attention
    pooled = x0.mean(axis=(2, 3), keepdims=True)
    xc = (params["cweight"][None, :, None, None] * pooled
          + params["cbias"][None, :, None, None])
    y0 = x0 * jax.nn.sigmoid(xc)
    # spatial attention: GroupNorm(C//(2G) groups over C//(2G) channels)
    mu = x1.mean(axis=(2, 3), keepdims=True)
    var = ((x1 - mu) ** 2).mean(axis=(2, 3), keepdims=True)
    xs = (x1 - mu) * jax.lax.rsqrt(var + EPS)
    xs = (xs * params["gn_weight"][None, :, None, None]
          + params["gn_bias"][None, :, None, None])
    xs = (params["sweight"][None, :, None, None] * xs
          + params["sbias"][None, :, None, None])
    y1 = x1 * jax.nn.sigmoid(xs)
    out = jnp.concatenate([y0, y1], axis=1).reshape(B, C, H, W)
    # channel_shuffle(groups=2)
    out = out.reshape(B, 2, C // 2, H, W).transpose(0, 2, 1, 3, 4).reshape(B, C, H, W)
    return out


# ----------------------------------- main ------------------------------------

if __name__ == "__main__":
    B, C, H, W = 2, 64, 16, 16
    G = 8
    Ch = C // (2 * G)   # 4

    key = jax.random.PRNGKey(0)
    ks = jax.random.split(key, 8)
    # Random (non-default) parameters so the correctness check is meaningful
    # (the module's default init of cweight=sweight=0 would hide bugs).
    params = dict(
        cweight=0.5 * jax.random.normal(ks[0], (Ch,), jnp.float32),
        cbias=1.0 + 0.1 * jax.random.normal(ks[1], (Ch,), jnp.float32),
        sweight=0.5 * jax.random.normal(ks[2], (Ch,), jnp.float32),
        sbias=1.0 + 0.1 * jax.random.normal(ks[3], (Ch,), jnp.float32),
        gn_weight=1.0 + 0.1 * jax.random.normal(ks[4], (Ch,), jnp.float32),
        gn_bias=0.1 * jax.random.normal(ks[5], (Ch,), jnp.float32),
    )
    x = jax.random.normal(ks[6], (B, C, H, W), jnp.float32)

    fwd = jax.jit(functools.partial(shuffle_attention_forward, G=G))

    # f32 path
    out = jax.block_until_ready(fwd(x, params))
    ref = jax.block_until_ready(ref_forward(x, params, G))
    assert out.shape == (B, C, H, W), out.shape
    err = float(jnp.max(jnp.abs(out - ref)))
    assert err < 1e-4, f"max abs err vs reference (f32): {err}"

    # bf16 I/O path (model-dtype I/O, f32 compute inside the kernel)
    x_bf16 = x.astype(jnp.bfloat16)
    out_bf = jax.block_until_ready(fwd(x_bf16, params))
    ref_bf = ref_forward(x_bf16.astype(jnp.float32), params, G)
    assert out_bf.dtype == jnp.bfloat16
    err_bf = float(jnp.max(jnp.abs(out_bf.astype(jnp.float32) - ref_bf)))
    assert err_bf < 5e-2, f"max abs err vs reference (bf16 I/O): {err_bf}"

    print("KERNEL_OK")
</pallas_src>

<mosaic_0001>
module attributes {stable_mosaic.version = 11 : i64} {
  func.func @shuffle_attention_kernel(%arg0: i32, %arg1: memref<1x2x32x256xf32, #tpu.memory_space<vmem>>, %arg2: memref<3x32x1xf32, #tpu.memory_space<vmem>>, %arg3: memref<1x32x512xf32, #tpu.memory_space<vmem>>) attributes {dimension_semantics = [#tpu.dimension_semantics<parallel>], iteration_bounds = array<i64: 2>, scalar_prefetch = 0 : i64, scratch_operands = 0 : i64, tpu.core_type = #tpu.core_type<tc>, window_params = [{transform_indices = @transform_0, window_bounds = array<i64: 1, 2, 32, 256>}, {pipeline_mode = #tpu.pipeline_mode<synchronous>, transform_indices = @transform_1, window_bounds = array<i64: 3, 32, 1>}, {transform_indices = @transform_2, window_bounds = array<i64: 1, 32, 512>}]} {
    %c0 = arith.constant 0 : index
    %c0_0 = arith.constant 0 : index
    %c0_1 = arith.constant 0 : index
    %0 = vector.load %arg2[%c0, %c0_0, %c0_1] : memref<3x32x1xf32, #tpu.memory_space<vmem>>, vector<1x32x1xf32>
    %1 = vector.shape_cast %0 : vector<1x32x1xf32> to vector<32x1xf32>
    %c1 = arith.constant 1 : index
    %c0_2 = arith.constant 0 : index
    %c0_3 = arith.constant 0 : index
    %2 = vector.load %arg2[%c1, %c0_2, %c0_3] : memref<3x32x1xf32, #tpu.memory_space<vmem>>, vector<1x32x1xf32>
    %3 = vector.shape_cast %2 : vector<1x32x1xf32> to vector<32x1xf32>
    %c2 = arith.constant 2 : index
    %c0_4 = arith.constant 0 : index
    %c0_5 = arith.constant 0 : index
    %4 = vector.load %arg2[%c2, %c0_4, %c0_5] : memref<3x32x1xf32, #tpu.memory_space<vmem>>, vector<1x32x1xf32>
    %5 = vector.shape_cast %4 : vector<1x32x1xf32> to vector<32x1xf32>
    %c0_6 = arith.constant 0 : index
    %c0_7 = arith.constant 0 : index
    %c0_8 = arith.constant 0 : index
    %c0_9 = arith.constant 0 : index
    %6 = vector.load %arg1[%c0_6, %c0_7, %c0_8, %c0_9] : memref<1x2x32x256xf32, #tpu.memory_space<vmem>>, vector<1x1x32x256xf32>
    %7 = vector.shape_cast %6 : vector<1x1x32x256xf32> to vector<1x32x256xf32>
    %cst = arith.constant dense<0.000000e+00> : vector<1x32xf32>
    %8 = vector.multi_reduction <add>, %7, %cst [2] : vector<1x32x256xf32> to vector<1x32xf32>
    %9 = vector.shape_cast %8 : vector<1x32xf32> to vector<1x32x1xf32>
    %cst_10 = arith.constant 2.560000e+02 : f32
    %10 = vector.broadcast %cst_10 : f32 to vector<1x32x1xf32>
    %11 = arith.divf %9, %10 : vector<1x32x1xf32>
    %12 = vector.broadcast %11 : vector<1x32x1xf32> to vector<1x32x256xf32>
    %13 = arith.subf %7, %12 : vector<1x32x256xf32>
    %14 = arith.mulf %13, %13 : vector<1x32x256xf32>
    %cst_11 = arith.constant dense<0.000000e+00> : vector<1x32xf32>
    %15 = vector.multi_reduction <add>, %14, %cst_11 [2] : vector<1x32x256xf32> to vector<1x32xf32>
    %16 = vector.shape_cast %15 : vector<1x32xf32> to vector<1x32x1xf32>
    %cst_12 = arith.constant 2.560000e+02 : f32
    %17 = vector.broadcast %cst_12 : f32 to vector<1x32x1xf32>
    %18 = arith.divf %16, %17 : vector<1x32x1xf32>
    %19 = vector.broadcast %11 : vector<1x32x1xf32> to vector<1x32x256xf32>
    %20 = arith.subf %7, %19 : vector<1x32x256xf32>
    %cst_13 = arith.constant 9.99999974E-6 : f32
    %21 = vector.broadcast %cst_13 : f32 to vector<1x32x1xf32>
    %22 = arith.addf %18, %21 : vector<1x32x1xf32>
    %23 = math.rsqrt %22 : vector<1x32x1xf32>
    %24 = vector.broadcast %23 : vector<1x32x1xf32> to vector<1x32x256xf32>
    %25 = arith.mulf %20, %24 : vector<1x32x256xf32>
    %cst_14 = arith.constant 5.000000e-01 : f32
    %26 = vector.broadcast %cst_14 : f32 to vector<32x1xf32>
    %27 = arith.cmpf ogt, %5, %26 : vector<32x1xf32>
    %28 = vector.shape_cast %27 : vector<32x1xi1> to vector<1x32x1xi1>
    %29 = vector.broadcast %28 : vector<1x32x1xi1> to vector<1x32x256xi1>
    %30 = vector.shape_cast %11 : vector<1x32x1xf32> to vector<1x32x1xf32>
    %31 = vector.broadcast %30 : vector<1x32x1xf32> to vector<1x32x256xf32>
    %32 = arith.select %29, %31, %25 : vector<1x32x256xi1>, vector<1x32x256xf32>
    %33 = vector.shape_cast %1 : vector<32x1xf32> to vector<1x32x1xf32>
    %34 = vector.broadcast %33 : vector<1x32x1xf32> to vector<1x32x256xf32>
    %35 = arith.mulf %34, %32 : vector<1x32x256xf32>
    %36 = vector.shape_cast %3 : vector<32x1xf32> to vector<1x32x1xf32>
    %37 = vector.broadcast %36 : vector<1x32x1xf32> to vector<1x32x256xf32>
    %38 = arith.addf %35, %37 : vector<1x32x256xf32>
    %39 = arith.negf %38 : vector<1x32x256xf32>
    %40 = math.exp %39 : vector<1x32x256xf32>
    %cst_15 = arith.constant 1.000000e+00 : f32
    %41 = vector.broadcast %cst_15 : f32 to vector<1x32x256xf32>
    %42 = arith.addf %41, %40 : vector<1x32x256xf32>
    %43 = arith.divf %41, %42 : vector<1x32x256xf32>
    %44 = arith.mulf %7, %43 : vector<1x32x256xf32>
    %c0_16 = arith.constant 0 : index
    %c0_17 = arith.constant 0 : index
    %c0_18 = arith.constant 0 : index
    %45 = vector.load %arg3[%c0_16, %c0_17, %c0_18] : memref<1x32x512xf32, #tpu.memory_space<vmem>>, vector<1x32x256xf32>
    tpu.vector_store %arg3[%c0_16, %c0_17, %c0_18], %44 {strides = array<i32>} : memref<1x32x512xf32, #tpu.memory_space<vmem>>, vector<1x32x256xf32>,
    %c0_19 = arith.constant 0 : index
    %c1_20 = arith.constant 1 : index
    %c0_21 = arith.constant 0 : index
    %c0_22 = arith.constant 0 : index
    %46 = vector.load %arg1[%c0_19, %c1_20, %c0_21, %c0_22] : memref<1x2x32x256xf32, #tpu.memory_space<vmem>>, vector<1x1x32x256xf32>
    %47 = vector.shape_cast %46 : vector<1x1x32x256xf32> to vector<1x32x256xf32>
    %cst_23 = arith.constant dense<0.000000e+00> : vector<1x32xf32>
    %48 = vector.multi_reduction <add>, %47, %cst_23 [2] : vector<1x32x256xf32> to vector<1x32xf32>
    %49 = vector.shape_cast %48 : vector<1x32xf32> to vector<1x32x1xf32>
    %cst_24 = arith.constant 2.560000e+02 : f32
    %50 = vector.broadcast %cst_24 : f32 to vector<1x32x1xf32>
    %51 = arith.divf %49, %50 : vector<1x32x1xf32>
    %52 = vector.broadcast %51 : vector<1x32x1xf32> to vector<1x32x256xf32>
    %53 = arith.subf %47, %52 : vector<1x32x256xf32>
    %54 = arith.mulf %53, %53 : vector<1x32x256xf32>
    %cst_25 = arith.constant dense<0.000000e+00> : vector<1x32xf32>
    %55 = vector.multi_reduction <add>, %54, %cst_25 [2] : vector<1x32x256xf32> to vector<1x32xf32>
    %56 = vector.shape_cast %55 : vector<1x32xf32> to vector<1x32x1xf32>
    %cst_26 = arith.constant 2.560000e+02 : f32
    %57 = vector.broadcast %cst_26 : f32 to vector<1x32x1xf32>
    %58 = arith.divf %56, %57 : vector<1x32x1xf32>
    %59 = vector.broadcast %51 : vector<1x32x1xf32> to vector<1x32x256xf32>
    %60 = arith.subf %47, %59 : vector<1x32x256xf32>
    %cst_27 = arith.constant 9.99999974E-6 : f32
    %61 = vector.broadcast %cst_27 : f32 to vector<1x32x1xf32>
    %62 = arith.addf %58, %61 : vector<1x32x1xf32>
    %63 = math.rsqrt %62 : vector<1x32x1xf32>
    %64 = vector.broadcast %63 : vector<1x32x1xf32> to vector<1x32x256xf32>
    %65 = arith.mulf %60, %64 : vector<1x32x256xf32>
    %cst_28 = arith.constant 5.000000e-01 : f32
    %66 = vector.broadcast %cst_28 : f32 to vector<32x1xf32>
    %67 = arith.cmpf ogt, %5, %66 : vector<32x1xf32>
    %68 = vector.shape_cast %67 : vector<32x1xi1> to vector<1x32x1xi1>
    %69 = vector.broadcast %68 : vector<1x32x1xi1> to vector<1x32x256xi1>
    %70 = vector.shape_cast %51 : vector<1x32x1xf32> to vector<1x32x1xf32>
    %71 = vector.broadcast %70 : vector<1x32x1xf32> to vector<1x32x256xf32>
    %72 = arith.select %69, %71, %65 : vector<1x32x256xi1>, vector<1x32x256xf32>
    %73 = vector.shape_cast %1 : vector<32x1xf32> to vector<1x32x1xf32>
    %74 = vector.broadcast %73 : vector<1x32x1xf32> to vector<1x32x256xf32>
    %75 = arith.mulf %74, %72 : vector<1x32x256xf32>
    %76 = vector.shape_cast %3 : vector<32x1xf32> to vector<1x32x1xf32>
    %77 = vector.broadcast %76 : vector<1x32x1xf32> to vector<1x32x256xf32>
    %78 = arith.addf %75, %77 : vector<1x32x256xf32>
    %79 = arith.negf %78 : vector<1x32x256xf32>
    %80 = math.exp %79 : vector<1x32x256xf32>
    %cst_29 = arith.constant 1.000000e+00 : f32
    %81 = vector.broadcast %cst_29 : f32 to vector<1x32x256xf32>
    %82 = arith.addf %81, %80 : vector<1x32x256xf32>
    %83 = arith.divf %81, %82 : vector<1x32x256xf32>
    %84 = arith.mulf %47, %83 : vector<1x32x256xf32>
    %c0_30 = arith.constant 0 : index
    %c0_31 = arith.constant 0 : index
    %c256 = arith.constant 256 : index
    %85 = vector.load %arg3[%c0_30, %c0_31, %c256] : memref<1x32x512xf32, #tpu.memory_space<vmem>>, vector<1x32x256xf32>
    tpu.vector_store %arg3[%c0_30, %c0_31, %c256], %84 {strides = array<i32>} : memref<1x32x512xf32, #tpu.memory_space<vmem>>, vector<1x32x256xf32>,
    return
  }
  func.func @transform_0(%arg0: i32) -> (i32, i32, i32, i32) {
    %c0_i32 = arith.constant 0 : i32
    %c0_i32_0 = arith.constant 0 : i32
    %c0_i32_1 = arith.constant 0 : i32
    %c0_i32_2 = arith.constant 0 : i32
    return %arg0, %c0_i32, %c0_i32_0, %c0_i32_1 : i32, i32, i32, i32
  }
  func.func @transform_1(%arg0: i32) -> (i32, i32, i32) {
    %c0_i32 = arith.constant 0 : i32
    %c0_i32_0 = arith.constant 0 : i32
    %c0_i32_1 = arith.constant 0 : i32
    %c0_i32_2 = arith.constant 0 : i32
    return %c0_i32, %c0_i32_0, %c0_i32_1 : i32, i32, i32
  }
  func.func @transform_2(%arg0: i32) -> (i32, i32, i32) {
    %c0_i32 = arith.constant 0 : i32
    %c0_i32_0 = arith.constant 0 : i32
    %c0_i32_1 = arith.constant 0 : i32
    return %arg0, %c0_i32, %c0_i32_0 : i32, i32, i32
  }
}

</mosaic_0001>

<bundles_post_ra>
// kernel: shuffle_attention_forward.1
= control target key start
LH: loop header
LB: loop body
LE: loop exit
PB: predicated region body
PF: predicated region fallthrough
CT: control target
= control target key end

     0   :  { %s759_s9 = smov 0   ;;  %s1125_s0 = inlined_call_operand.vmem [shape: f32[2,2,32,256], index: 0, kind: input, shape index: {}]   ;;  %s1126_s1 = inlined_call_operand.vmem [shape: f32[3,32,1], index: 1, kind: input, shape index: {}]   ;;  %s1127_s2 = inlined_call_operand.vmem [shape: f32[2,32,512], index: 2, kind: output, shape index: {}]  }
   0x1 LB: > { %s599_s10 = sadd.s32 4294967295, %s741_s9   ;;  %p603_p0 = scmp.ge.s32.totalorder %s741_s9, 1  ;;  %s741_s9 = sphi %s759_s9, %s12_s9  }
   0x2   : > { %p112_p1 = scmp.lt.s32.totalorder %s741_s9, 3 }
   0x4   : > { %p113_p2 = pnand %p603_p0, %p112_p1 }
   0x6   : > { %116 = sbr.rel (%p113_p2) target bundleno = 394 (0x18a), region = 28 }
   0xd   : > { %p134_p3 = scmp.lt.s32.totalorder %s599_s10, 1  ;;  %v743_v0 = vmov 0   ;;  %v613_v25 = vld [vmem:[%s1126_s1 + $0x48] sm:$0xff]  ;;  %v614_v26 = vld [vmem:[%s1126_s1 + $0x50] sm:$0xff]  ;;  %v612_v27 = vld [vmem:[%s1126_s1 + $0x40] sm:$0xff] }
   0xe   : > { %654 = vset.pattern.permute.xlu1 %v743_v0  ;;  %653 = vset.pattern.permute.xlu0 %v743_v0  ;;  %vm232_vm0 = vcmp.gt.f32.partialorder %v613_v25, 0.5  ;;  %vm233_vm1 = vcmp.gt.f32.partialorder %v614_v26, 0.5  ;;  %vm231_vm2 = vcmp.gt.f32.partialorder %v612_v27, 0.5  ;;  %v615_v29 = vld [vmem:[%s1126_s1 + $0x58] sm:$0xff]  ;;  %v609_v33 = vld [vmem:[%s1126_s1 + $0x28] sm:$0xff]  ;;  %v144_v34 = vld [vmem:[%s1126_s1] sm:$0xff] }
   0xf   : > { %s1141_s10 = smov (!%p134_p3, %s599_s10), 1  ;;  %v236_v28 = vsel %vm232_vm0, 1, %v743_v0  ;;  %v237_v30 = vsel %vm233_vm1, 1, %v743_v0  ;;  %v235_v31 = vsel %vm231_vm2, 1, %v743_v0  ;;  %vm234_vm3 = vcmp.gt.f32.partialorder %v615_v29, 0.5  ;;  %v145_v35 = vld [vmem:[%s1126_s1 + $0x8] sm:$0xff] }
  0x10   : > { %s642_s11 = sshll.u32 %s1141_s10, 7  ;;  %v238_v32 = vsel %vm234_vm3, 1, %v743_v0  ;;  %v146_v36 = vld [vmem:[%s1126_s1 + $0x10] sm:$0xff]  ;;  %v147_v37 = vld [vmem:[%s1126_s1 + $0x18] sm:$0xff]  ;;  %v608_v38 = vld [vmem:[%s1126_s1 + $0x20] sm:$0xff] }
  0x11   : > { %s138_s14 = scalar_lea.vmem %s1125_s0, %s642_s11  ;;  %s1088_s16 = scalar_lea.vmem %s1127_s2, %s642_s11 }
  0x12   : > { %v775_v1 = vld [vmem:[%s138_s14] sm:$0xff]  ;;  %v777_v2 = vld [vmem:[%s138_s14 + $0x8] sm:$0xff]  ;;  %v785_v6 = vld [vmem:[%s138_s14 + $0x10] sm:$0xff] }
  0x13   : > { %v779_v3 = vld [vmem:[%s138_s14 + $0x20] sm:$0xff]  ;;  %v166_v4 = vadd.f32 %v777_v2, %v775_v1  ;;  %v783_v5 = vld [vmem:[%s138_s14 + $0x28] sm:$0xff]  ;;  %v787_v7 = vld [vmem:[%s138_s14 + $0x18] sm:$0xff] }
  0x14   : > { %v172_v8 = vadd.f32 %v783_v5, %v779_v3  ;;  %v791_v9 = vld [vmem:[%s138_s14 + $0x30] sm:$0xff]  ;;  %v793_v10 = vld [vmem:[%s138_s14 + $0x38] sm:$0xff]  ;;  %v169_v11 = vadd.f32 %v787_v7, %v785_v6  ;;  %v799_v13 = vld [vmem:[%s138_s14 + $0x40] sm:$0xff] }
  0x15   : > { %1132 = vst [vmem:[#allocation2_spill] sm:$0xff] %v791_v9  ;;  %1133 = vst [vmem:[#allocation3_spill] sm:$0xff] %v793_v10  ;;  %167 = vadd.xlane.f32.xlu0 %v166_v4  ;;  %v175_v12 = vadd.f32 %v793_v10, %v791_v9  ;;  %v801_v14 = vld [vmem:[%s138_s14 + $0x48] sm:$0xff]  ;;  %v803_v15 = vld [vmem:[%s138_s14 + $0x50] sm:$0xff] }
  0x16   : > { %173 = vadd.xlane.f32.xlu1 %v172_v8  ;;  %v805_v16 = vld [vmem:[%s138_s14 + $0x58] sm:$0xff]  ;;  %v392_v17 = vadd.f32 %v801_v14, %v799_v13  ;;  %v811_v19 = vld [vmem:[%s138_s14 + $0x60] sm:$0xff]  ;;  %v813_v20 = vld [vmem:[%s138_s14 + $0x68] sm:$0xff] }
  0x17   : > { %v395_v18 = vadd.f32 %v805_v16, %v803_v15  ;;  %v815_v21 = vld [vmem:[%s138_s14 + $0x70] sm:$0xff]  ;;  %v817_v22 = vld [vmem:[%s138_s14 + $0x78] sm:$0xff]  ;;  %v398_v23 = vadd.f32 %v813_v20, %v811_v19 }
  0x18   : > { %1134 = vst [vmem:[#allocation4_spill] sm:$0xff] %v815_v21  ;;  %1135 = vst [vmem:[#allocation5_spill] sm:$0xff] %v817_v22  ;;  %v401_v24 = vadd.f32 %v817_v22, %v815_v21 }
  0x19   : > { %170 = vadd.xlane.f32.xlu0 %v169_v11 }
  0x1a   : > { %176 = vadd.xlane.f32.xlu1 %v175_v12 }
  0x1d   : > { %393 = vadd.xlane.f32.xlu0 %v392_v17 }
  0x1e   : > { %396 = vadd.xlane.f32.xlu1 %v395_v18 }
  0x21   : > { %399 = vadd.xlane.f32.xlu0 %v398_v23 }
  0x22   : > { %402 = vadd.xlane.f32.xlu1 %v401_v24 }
  0x33   : > { %243 = vperm.xlu1 %654, %v236_v28  }
  0x37   : > { %246 = vperm.xlu1 %654, %v237_v30   ;;  %240 = vperm.xlu0 %653, %v235_v31  }
  0x3b   : > { %249 = vperm.xlu1 %654, %v238_v32   ;;  %298 = vperm.xlu0 %653, %v609_v33  }
  0x3f   : > { %265 = vperm.xlu1 %654, %v144_v34  }
  0x43   : > { %270 = vperm.xlu1 %654, %v145_v35  }
  0x47   : > { %275 = vperm.xlu1 %654, %v146_v36  }
  0x4b   : > { %280 = vperm.xlu1 %654, %v147_v37  }
  0x4f   : > { %293 = vperm.xlu1 %654, %v608_v38  }
  0xa2   : > { %v168_v39 = vpop.xlane.xlu0 %167 }
  0xa3   : > { %v853_v40 = vmul.f32 0.00390625, %v168_v39  ;;  %v174_v41 = vpop.xlane.xlu1 %173 }
  0xa4   : > { %v855_v42 = vmul.f32 0.00390625, %v174_v41 }
  0xa5   : > { %v859_v43 = vsub.f32 %v775_v1, %v853_v40  ;;  %v863_v44 = vsub.f32 %v777_v2, %v853_v40 }
  0xa6   : > { %v171_v45 = vpop.xlane.xlu0 %170  ;;  %v867_v46 = vsub.f32 %v779_v3, %v855_v42  ;;  %v871_v47 = vsub.f32 %v783_v5, %v855_v42 }
  0xa7   : > { %v873_v48 = vmul.f32 0.00390625, %v171_v45  ;;  %v177_v49 = vpop.xlane.xlu1 %176  ;;  %v191_v50 = vmul.f32 %v859_v43, %v859_v43  ;;  %v192_v51 = vmul.f32 %v863_v44, %v863_v44 }
  0xa8   : > { %v879_v52 = vmul.f32 0.00390625, %v177_v49  ;;  %v195_v53 = vmul.f32 %v867_v46, %v867_v46  ;;  %v196_v54 = vmul.f32 %v871_v47, %v871_v47 }
  0xa9   : > { %v199_v55 = vadd.f32 %v192_v51, %v191_v50  ;;  %v887_v56 = vsub.f32 %v785_v6, %v873_v48  ;;  %v891_v57 = vsub.f32 %v787_v7, %v873_v48 }
  0xaa   : > { %v394_v58 = vpop.xlane.xlu0 %393  ;;  %v895_v59 = vsub.f32 %v791_v9, %v879_v52  ;;  %v899_v60 = vsub.f32 %v793_v10, %v879_v52  ;;  %v205_v63 = vadd.f32 %v196_v54, %v195_v53 }
  0xab   : > { %v901_v61 = vmul.f32 0.00390625, %v394_v58  ;;  %200 = vadd.xlane.f32.xlu0 %v199_v55  ;;  %v397_v62 = vpop.xlane.xlu1 %396  ;;  %v193_v0 = vmul.f32 %v887_v56, %v887_v56  ;;  %v194_v4 = vmul.f32 %v891_v57, %v891_v57  ;;  %v610_v55 = vld [vmem:[%s1126_s1 + $0x30] sm:$0xff]  ;;  %v611_v58 = vld [vmem:[%s1126_s1 + $0x38] sm:$0xff] }
  0xac   : > { %v907_v8 = vmul.f32 0.00390625, %v397_v62  ;;  %v197_v11 = vmul.f32 %v895_v59, %v895_v59  ;;  %v198_v12 = vmul.f32 %v899_v60, %v899_v60 }
  0xad   : > { %v202_v17 = vadd.f32 %v194_v4, %v193_v0  ;;  %v915_v18 = vsub.f32 %v799_v13, %v901_v61  ;;  %v919_v23 = vsub.f32 %v801_v14, %v901_v61 }
  0xae   : > { %v400_v24 = vpop.xlane.xlu0 %399  ;;  %v923_v25 = vsub.f32 %v803_v15, %v907_v8  ;;  %v927_v26 = vsub.f32 %v805_v16, %v907_v8  ;;  %v208_v29 = vadd.f32 %v198_v12, %v197_v11 }
  0xaf   : > { %v929_v27 = vmul.f32 0.00390625, %v400_v24  ;;  %206 = vadd.xlane.f32.xlu0 %v205_v63  ;;  %203 = vadd.xlane.f32.xlu1 %v202_v17  ;;  %v403_v28 = vpop.xlane.xlu1 %402  ;;  %v416_v30 = vmul.f32 %v915_v18, %v915_v18  ;;  %v417_v31 = vmul.f32 %v919_v23, %v919_v23 }
  0xb0   : > { %v935_v32 = vmul.f32 0.00390625, %v403_v28  ;;  %v418_v33 = vmul.f32 %v923_v25, %v923_v25  ;;  %v419_v34 = vmul.f32 %v927_v26, %v927_v26 }
  0xb1   : > { %v424_v35 = vadd.f32 %v417_v31, %v416_v30  ;;  %v943_v36 = vsub.f32 %v811_v19, %v929_v27  ;;  %v947_v37 = vsub.f32 %v813_v20, %v929_v27 }
  0xb2   : > { %v951_v38 = vsub.f32 %v815_v21, %v935_v32  ;;  %v955_v39 = vsub.f32 %v817_v22, %v935_v32  ;;  %v427_v41 = vadd.f32 %v419_v34, %v418_v33 }
  0xb3   : > { %209 = vadd.xlane.f32.xlu1 %v208_v29  ;;  %425 = vadd.xlane.f32.xlu0 %v424_v35  ;;  %v420_v45 = vmul.f32 %v943_v36, %v943_v36  ;;  %v421_v49 = vmul.f32 %v947_v37, %v947_v37  ;;  %v971_v62 = vpop.permute.xlu1 %243 }
  0xb4   : > { %v422_v50 = vmul.f32 %v951_v38, %v951_v38  ;;  %v423_v51 = vmul.f32 %v955_v39, %v955_v39  ;;  %vm252_vm5 = vcmp.eq.s32.totalorder %v971_v62, 1 }
  0xb5   : > { %v430_v53 = vadd.f32 %v421_v49, %v420_v45 }
  0xb6   : > { %v433_v54 = vadd.f32 %v423_v51, %v422_v50  ;;  %v983_v17 = vpop.permute.xlu0 %240 }
  0xb7   : > { %428 = vadd.xlane.f32.xlu1 %v427_v41  ;;  %431 = vadd.xlane.f32.xlu0 %v430_v53  ;;  %v973_v63 = vpop.permute.xlu1 %246  ;;  %vm251_vm4 = vcmp.eq.s32.totalorder %v983_v17, 1 }
  0xb8   : > { %vm253_vm6 = vcmp.eq.s32.totalorder %v973_v63, 1 }
  0xba   : > { %v987_v28 = vpop.permute.xlu0 %298 }
  0xbb   : > { %434 = vadd.xlane.f32.xlu1 %v433_v54  ;;  %v975_v0 = vpop.permute.xlu1 %249 }
  0xbc   : > { %vm254_vm7 = vcmp.eq.s32.totalorder %v975_v0, 1 }
  0xbf   : > { %v977_v4 = vpop.permute.xlu1 %265 }
  0xc3   : > { %v979_v11 = vpop.permute.xlu1 %270 }
  0xc7   : > { %v981_v12 = vpop.permute.xlu1 %275 }
  0xcb   : > { %v985_v24 = vpop.permute.xlu1 %280 }
  0xcc   : > { %303 = vperm.xlu1 %654, %v610_v55  }
  0xcd   : > { %308 = vperm.xlu0 %653, %v611_v58  }
  0xcf   : > { %v989_v29 = vpop.permute.xlu1 %293 }
 0x138   : > { %v201_v30 = vpop.xlane.xlu0 %200 }
 0x139   : > { %v211_v31 = vmul.f32 0.00390625, %v201_v30 }
 0x13b   : > { %v215_v33 = vadd.f32 1e-05, %v211_v31 }
 0x13c   : > { %v204_v34 = vpop.xlane.xlu1 %203  ;;  %v207_v35 = vpop.xlane.xlu0 %206 }
 0x13d   : > { %655 = vrsqrt.f32 %v215_v33  ;;  %v212_v41 = vmul.f32 0.00390625, %v204_v34  ;;  %v213_v45 = vmul.f32 0.00390625, %v207_v35 }
 0x13f   : > { %v216_v49 = vadd.f32 1e-05, %v212_v41  ;;  %v217_v50 = vadd.f32 1e-05, %v213_v45 }
 0x140   : > { %v210_v51 = vpop.xlane.xlu1 %209  ;;  %v426_v53 = vpop.xlane.xlu0 %425 }
 0x141   : > { %657 = vrsqrt.f32 %v216_v49  ;;  %v214_v54 = vmul.f32 0.00390625, %v210_v51  ;;  %v436_v55 = vmul.f32 0.00390625, %v426_v53 }
 0x142   : > { %659 = vrsqrt.f32 %v217_v50 }
 0x143   : > { %v218_v58 = vadd.f32 1e-05, %v214_v54  ;;  %v440_v22 = vadd.f32 1e-05, %v436_v55 }
 0x144   : > { %v429_v21 = vpop.xlane.xlu1 %428  ;;  %v432_v10 = vpop.xlane.xlu0 %431 }
 0x145   : > { %661 = vrsqrt.f32 %v218_v58  ;;  %v437_v30 = vmul.f32 0.00390625, %v429_v21  ;;  %v438_v31 = vmul.f32 0.00390625, %v432_v10 }
 0x146   : > { %663 = vrsqrt.f32 %v440_v22 }
 0x147   : > { %v656_v9 = vpop.eup %655  ;;  %v441_v33 = vadd.f32 1e-05, %v437_v30  ;;  %v442_v34 = vadd.f32 1e-05, %v438_v31 }
 0x148   : > { %v223_v35 = vmul.f32 %v656_v9, %v859_v43  ;;  %v224_v41 = vmul.f32 %v656_v9, %v863_v44  ;;  %v435_v45 = vpop.xlane.xlu1 %434 }
 0x149   : > { %665 = vrsqrt.f32 %v441_v33  ;;  %v439_v49 = vmul.f32 0.00390625, %v435_v45 }
 0x14a   : > { %v255_v50 = vsel %vm251_vm4, %v853_v40, %v223_v35  ;;  %v256_v10 = vsel %vm251_vm4, %v853_v40, %v224_v41  ;;  %667 = vrsqrt.f32 %v442_v34 }
 0x14b   : > { %v658_v21 = vpop.eup %657  ;;  %v283_v22 = vmul.f32 %v977_v4, %v255_v50  ;;  %v284_v43 = vmul.f32 %v977_v4, %v256_v10  ;;  %v443_v9 = vadd.f32 1e-05, %v439_v49 }
 0x14c   : > { %v660_v44 = vpop.eup %659  ;;  %v225_v51 = vmul.f32 %v658_v21, %v887_v56  ;;  %v226_v53 = vmul.f32 %v658_v21, %v891_v57 }
 0x14d   : > { %v311_v40 = vadd.f32 %v989_v29, %v283_v22  ;;  %v312_v54 = vadd.f32 %v989_v29, %v284_v43  ;;  %v227_v55 = vmul.f32 %v660_v44, %v867_v46  ;;  %669 = vrsqrt.f32 %v443_v9 }
 0x14e   : > { %v257_v58 = vsel %vm252_vm5, %v873_v48, %v225_v51  ;;  %v258_v30 = vsel %vm252_vm5, %v873_v48, %v226_v53  ;;  %v228_v56 = vmul.f32 %v660_v44, %v871_v47 }
 0x14f   : > { %v662_v57 = vpop.eup %661  ;;  %v616_v31 = vmul.f32 -1.442695, %v311_v40  ;;  %v617_v33 = vmul.f32 -1.442695, %v312_v54  ;;  %v285_v34 = vmul.f32 %v979_v11, %v257_v58  ;;  %v286_v35 = vmul.f32 %v979_v11, %v258_v30  ;;  %v304_v40 = vpop.permute.xlu1 %303 }
 0x150   : > { %v664_v41 = vpop.eup %663  ;;  %v259_v46 = vsel %vm253_vm6, %v855_v42, %v227_v55  ;;  %v260_v45 = vsel %vm253_vm6, %v855_v42, %v228_v56  ;;  %v229_v48 = vmul.f32 %v662_v57, %v895_v59  ;;  %v230_v47 = vmul.f32 %v662_v57, %v899_v60 }
 0x151   : > { %671 = vpow2.f32 %v616_v31  ;;  %v313_v49 = vadd.f32 %v987_v28, %v285_v34  ;;  %v314_v50 = vadd.f32 %v987_v28, %v286_v35  ;;  %v448_v10 = vmul.f32 %v664_v41, %v915_v18 }
 0x152   : > { %673 = vpow2.f32 %v617_v33  ;;  %v449_v21 = vmul.f32 %v664_v41, %v919_v23  ;;  %v287_v22 = vmul.f32 %v981_v12, %v259_v46  ;;  %v288_v43 = vmul.f32 %v981_v12, %v260_v45 }
 0x153   : > { %v666_v9 = vpop.eup %665  ;;  %v618_v42 = vmul.f32 -1.442695, %v313_v49  ;;  %v619_v44 = vmul.f32 -1.442695, %v314_v50  ;;  %v456_v59 = vsel %vm251_vm4, %v901_v61, %v448_v10  ;;  %v261_v60 = vsel %vm254_vm7, %v879_v52, %v229_v48 }
 0x154   : > { %v457_v18 = vsel %vm251_vm4, %v901_v61, %v449_v21  ;;  %v464_v23 = vmul.f32 %v456_v59, %v977_v4  ;;  %v450_v51 = vmul.f32 %v666_v9, %v923_v25  ;;  %v451_v53 = vmul.f32 %v666_v9, %v927_v26  ;;  %v668_v54 = vpop.eup %667 }
 0x155   : > { %675 = vpow2.f32 %v618_v42  ;;  %v465_v55 = vmul.f32 %v457_v18, %v977_v4  ;;  %v315_v58 = vadd.f32 %v304_v40, %v287_v22  ;;  %v316_v30 = vadd.f32 %v304_v40, %v288_v43  ;;  %v309_v43 = vpop.permute.xlu0 %308 }
 0x156   : > { %677 = vpow2.f32 %v619_v44  ;;  %v472_v56 = vadd.f32 %v464_v23, %v989_v29  ;;  %v458_v61 = vsel %vm252_vm5, %v907_v8, %v450_v51  ;;  %v459_v25 = vsel %vm252_vm5, %v907_v8, %v451_v53 }
 0x157   : > { %v473_v26 = vadd.f32 %v465_v55, %v989_v29  ;;  %v466_v17 = vmul.f32 %v458_v61, %v979_v11  ;;  %v467_v57 = vmul.f32 %v459_v25, %v979_v11  ;;  %v620_v4 = vmul.f32 -1.442695, %v315_v58  ;;  %v670_v31 = vpop.eup %669 }
 0x158   : > { %v632_v33 = vmul.f32 -1.442695, %v472_v56  ;;  %v621_v34 = vmul.f32 -1.442695, %v316_v30  ;;  %v452_v35 = vmul.f32 %v668_v54, %v943_v36  ;;  %v453_v41 = vmul.f32 %v668_v54, %v947_v37 }
 0x159   : > { %v633_v46 = vmul.f32 -1.442695, %v473_v26  ;;  %v474_v45 = vadd.f32 %v466_v17, %v987_v28  ;;  %v475_v62 = vadd.f32 %v467_v57, %v987_v28  ;;  %679 = vpow2.f32 %v620_v4 }
 0x15a   : > { %681 = vpow2.f32 %v632_v33  ;;  %v460_v8 = vsel %vm253_vm6, %v929_v27, %v452_v35  ;;  %v461_v11 = vsel %vm253_vm6, %v929_v27, %v453_v41  ;;  %v262_v36 = vsel %vm254_vm7, %v879_v52, %v230_v47 }
 0x15b   : > { %v672_v37 = vpop.eup %671  ;;  %683 = vpow2.f32 %v633_v46  ;;  %v634_v29 = vmul.f32 -1.442695, %v474_v45  ;;  %v635_v48 = vmul.f32 -1.442695, %v475_v62  ;;  %v468_v28 = vmul.f32 %v460_v8, %v981_v12 }
 0x15c   : > { %v674_v49 = vpop.eup %673  ;;  %v343_v50 = vadd.f32 1.0, %v672_v37  ;;  %685 = vpow2.f32 %v621_v34  ;;  %v469_v10 = vmul.f32 %v461_v11, %v981_v12  ;;  %v289_v21 = vmul.f32 %v985_v24, %v261_v60 }
 0x15d   : > { %v344_v22 = vadd.f32 1.0, %v674_v49  ;;  %687 = vpow2.f32 %v634_v29  ;;  %v476_v27 = vadd.f32 %v468_v28, %v304_v40  ;;  %v454_v52 = vmul.f32 %v670_v31, %v951_v38 }
 0x15e   : > { %689 = vrcp.f32 %v343_v50  ;;  %v477_v63 = vadd.f32 %v469_v10, %v304_v40  ;;  %v455_v47 = vmul.f32 %v670_v31, %v955_v39  ;;  %v290_v44 = vmul.f32 %v985_v24, %v262_v36 }
 0x15f   : > { %v676_v9 = vpop.eup %675  ;;  %691 = vrcp.f32 %v344_v22  ;;  %v636_v42 = vmul.f32 -1.442695, %v476_v27  ;;  %v317_v59 = vadd.f32 %v309_v43, %v289_v21  ;;  %v462_v23 = vsel %vm254_vm7, %v935_v32, %v454_v52 }
 0x160   : > { %v678_v18 = vpop.eup %677  ;;  %v345_v12 = vadd.f32 1.0, %v676_v9  ;;  %693 = vpow2.f32 %v635_v48  ;;  %v637_v60 = vmul.f32 -1.442695, %v477_v63  ;;  %v463_v38 = vsel %vm254_vm7, %v935_v32, %v455_v47 }
 0x161   : > { %v346_v51 = vadd.f32 1.0, %v678_v18  ;;  %695 = vpow2.f32 %v636_v42  ;;  %v470_v39 = vmul.f32 %v462_v23, %v985_v24  ;;  %v622_v53 = vmul.f32 -1.442695, %v317_v59  ;;  %v1136_v23 = vld [vmem:[#allocation2_spill] sm:$0xff] }
 0x162   : > { %697 = vrcp.f32 %v345_v12  ;;  %v471_v54 = vmul.f32 %v463_v38, %v985_v24  ;;  %v318_v55 = vadd.f32 %v309_v43, %v290_v44 }
 0x163   : > { %v680_v40 = vpop.eup %679  ;;  %699 = vrcp.f32 %v346_v51  ;;  %v478_v56 = vadd.f32 %v470_v39, %v309_v43  ;;  %v1137_v39 = vld [vmem:[#allocation3_spill] sm:$0xff] }
 0x164   : > { %v682_v58 = vpop.eup %681  ;;  %v347_v30 = vadd.f32 1.0, %v680_v40  ;;  %701 = vpow2.f32 %v637_v60  ;;  %v623_v57 = vmul.f32 -1.442695, %v318_v55  ;;  %v479_v4 = vadd.f32 %v471_v54, %v309_v43  ;;  %v1139_v55 = vld [vmem:[#allocation5_spill] sm:$0xff] }
 0x165   : > { %v684_v61 = vpop.eup %683  ;;  %v504_v25 = vadd.f32 1.0, %v682_v58  ;;  %703 = vpow2.f32 %v622_v53  ;;  %v638_v33 = vmul.f32 -1.442695, %v478_v56  ;;  %v1138_v53 = vld [vmem:[#allocation4_spill] sm:$0xff] }
 0x166   : > { %v686_v26 = vpop.eup %685  ;;  %v505_v0 = vadd.f32 1.0, %v684_v61  ;;  %705 = vrcp.f32 %v347_v30  ;;  %v639_v8 = vmul.f32 -1.442695, %v479_v4 }
 0x167   : > { %v688_v32 = vpop.eup %687  ;;  %707 = vrcp.f32 %v504_v25  ;;  %v348_v17 = vadd.f32 1.0, %v686_v26 }
 0x168   : > { %v690_v31 = vpop.eup %689  ;;  %709 = vrcp.f32 %v505_v0  ;;  %v506_v24 = vadd.f32 1.0, %v688_v32 }
 0x169   : > { %v692_v34 = vpop.eup %691  ;;  %v367_v35 = vmul.f32 %v690_v31, %v775_v1  ;;  %711 = vrcp.f32 %v348_v17 }
 0x16a   : > { %v694_v41 = vpop.eup %693  ;;  %v368_v46 = vmul.f32 %v692_v34, %v777_v2  ;;  %713 = vrcp.f32 %v506_v24 }
 0x16b   : > { %v696_v45 = vpop.eup %695  ;;  %375 = vst [vmem:[%s1088_s16] sm:$0xff] %v367_v35  ;;  %v507_v62 = vadd.f32 1.0, %v694_v41  ;;  %715 = vpow2.f32 %v623_v57 }
 0x16c   : > { %v698_v11 = vpop.eup %697  ;;  %376 = vst [vmem:[%s1088_s16 + $0x8] sm:$0xff] %v368_v46  ;;  %v508_v36 = vadd.f32 1.0, %v696_v45  ;;  %717 = vpow2.f32 %v638_v33 }
 0x16d   : > { %v700_v37 = vpop.eup %699  ;;  %v369_v29 = vmul.f32 %v698_v11, %v785_v6  ;;  %719 = vrcp.f32 %v507_v62 }
 0x16e   : > { %v702_v1 = vpop.eup %701  ;;  %v370_v48 = vmul.f32 %v700_v37, %v787_v7  ;;  %721 = vrcp.f32 %v508_v36 }
 0x16f   : > { %v704_v2 = vpop.eup %703  ;;  %377 = vst [vmem:[%s1088_s16 + $0x20] sm:$0xff] %v369_v29  ;;  %v509_v28 = vadd.f32 1.0, %v702_v1  ;;  %723 = vpow2.f32 %v639_v8 }
 0x170   : > { %v706_v49 = vpop.eup %705  ;;  %378 = vst [vmem:[%s1088_s16 + $0x28] sm:$0xff] %v370_v48  ;;  %v349_v50 = vadd.f32 1.0, %v704_v2 }
 0x171   : > { %v708_v10 = vpop.eup %707  ;;  %v371_v21 = vmul.f32 %v706_v49, %v779_v3  ;;  %725 = vrcp.f32 %v509_v28 }
 0x172   : > { %v710_v6 = vpop.eup %709  ;;  %v528_v7 = vmul.f32 %v708_v10, %v799_v13  ;;  %727 = vrcp.f32 %v349_v50 }
 0x173   : > { %v712_v22 = vpop.eup %711  ;;  %v529_v27 = vmul.f32 %v710_v6, %v801_v14  ;;  %379 = vst [vmem:[%s1088_s16 + $0x40] sm:$0xff] %v371_v21 }
 0x174   : > { %v714_v63 = vpop.eup %713  ;;  %536 = vst [vmem:[%s1088_s16 + $0x10] sm:$0xff] %v528_v7  ;;  %v372_v52 = vmul.f32 %v712_v22, %v783_v5 }
 0x175   : > { %v716_v47 = vpop.eup %715  ;;  %537 = vst [vmem:[%s1088_s16 + $0x18] sm:$0xff] %v529_v27  ;;  %v530_v43 = vmul.f32 %v714_v63, %v803_v15 }
 0x176   : > { %v718_v3 = vpop.eup %717  ;;  %380 = vst [vmem:[%s1088_s16 + $0x48] sm:$0xff] %v372_v52  ;;  %v350_v9 = vadd.f32 1.0, %v716_v47 }
 0x177   : > { %v720_v42 = vpop.eup %719  ;;  %538 = vst [vmem:[%s1088_s16 + $0x30] sm:$0xff] %v530_v43  ;;  %v510_v13 = vadd.f32 1.0, %v718_v3 }
 0x178   : > { %v722_v14 = vpop.eup %721  ;;  %v531_v44 = vmul.f32 %v720_v42, %v805_v16  ;;  %729 = vrcp.f32 %v350_v9 }
 0x179   : > { %v724_v59 = vpop.eup %723  ;;  %v532_v5 = vmul.f32 %v722_v14, %v811_v19  ;;  %731 = vrcp.f32 %v510_v13 }
 0x17a   : > { %539 = vst [vmem:[%s1088_s16 + $0x38] sm:$0xff] %v531_v44  ;;  %v511_v15 = vadd.f32 1.0, %v724_v59 }
 0x17b   : > { %v726_v18 = vpop.eup %725  ;;  %540 = vst [vmem:[%s1088_s16 + $0x50] sm:$0xff] %v532_v5 }
 0x17c   : > { %v728_v12 = vpop.eup %727  ;;  %v533_v60 = vmul.f32 %v726_v18, %v813_v20  ;;  %733 = vrcp.f32 %v511_v15 }
 0x17d   : > { %v373_v51 = vmul.f32 %v728_v12, %v1136_v23 }
 0x17e   : > { %541 = vst [vmem:[%s1088_s16 + $0x58] sm:$0xff] %v533_v60 }
 0x17f   : > { %381 = vst [vmem:[%s1088_s16 + $0x60] sm:$0xff] %v373_v51 }
 0x182   : > { %v730_v16 = vpop.eup %729 }
 0x183   : > { %v732_v38 = vpop.eup %731  ;;  %v374_v19 = vmul.f32 %v730_v16, %v1137_v39 }
 0x184   : > { %v534_v40 = vmul.f32 %v732_v38, %v1138_v53 }
 0x185   : > { %382 = vst [vmem:[%s1088_s16 + $0x68] sm:$0xff] %v374_v19 }
 0x186   : > { %v734_v54 = vpop.eup %733  ;;  %542 = vst [vmem:[%s1088_s16 + $0x70] sm:$0xff] %v534_v40 }
 0x187   : > { %v535_v58 = vmul.f32 %v734_v54, %v1139_v55 }
 0x189   : > { %543 = vst [vmem:[%s1088_s16 + $0x78] sm:$0xff] %v535_v58 }
 0x18a PF: > { %s12_s9 = sadd.s32 1, %s741_s9  }
 0x18b   : > { %p9_p4 = scmp.ge.s32.totalorder %s12_s9, 4  }
 0x18d   :  { %11 = sbr.rel (!%p9_p4) target bundleno = 1 (0x1), region = 61 }

</bundles_post_ra>
